<compile_context>
chip_gen: v7x
topology: tpu7x:2x2x1
jax: 0.10.0
libtpu: 0.0.40
codegen_flags: <defaults>
</compile_context>

<pallas_src>
import math

import jax
import jax.numpy as jnp
from jax.experimental import pallas as pl
from jax.experimental.pallas import tpu as pltpu


# Above anything this kernel needs, below v7x's 64 MiB physical VMEM per TC,
# and comfortably within v5e/v6e's 128 MiB physical.
_VMEM_LIMIT_BYTES = 36 * 1024 * 1024
_DEFAULT_BUDGET_BYTES = 20 * 1024 * 1024


def _row_dot_kernel(gu_ref, gi_ref, xui_ref):
    """Row-wise dot of two (tb, D) tiles -> lane-dense (1, tb) result.

    Accumulates in float32 (exact for f32 inputs, higher precision for bf16)
    and casts back to the output dtype on store.
    """
    prod = gu_ref[...].astype(jnp.float32) * gi_ref[...].astype(jnp.float32)  # (tb, D) VPU
    prod_t = jnp.transpose(prod)                                              # (D, tb)  XLU
    xui_ref[...] = jnp.sum(prod_t, axis=0, keepdims=True).astype(xui_ref.dtype)  # (1, tb)


def _squeeze_like_torch(x):
    """torch.squeeze semantics, but never drop below rank 2 (keep a batch row).

    Note: for a degenerate B == 1 batch torch.squeeze gives a 1-D tensor and
    torch.sum(..., 1) would error; we keep a (1, D) row instead so the natural
    intent (one row-dot) still works.  Semantics diverge only for that
    degenerate case.
    """
    y = jnp.squeeze(x)
    if y.ndim == 0:
        y = y.reshape(1, 1)
    elif y.ndim == 1:
        y = y.reshape(1, -1)
    return y


def _vmem_budget_bytes():
    """Generation-aware VMEM budget for pipelined blocks + intermediates."""
    budget = _DEFAULT_BUDGET_BYTES
    try:
        cap = getattr(pltpu.get_tpu_info(), "vmem_capacity_bytes", None)
        if cap:
            # v7x: 64 MiB/TC -> ~21 MiB; v5e/v6e: 128 MiB -> capped at 24 MiB.
            budget = max(12 * 1024 * 1024, min(24 * 1024 * 1024, cap // 3))
    except Exception:
        pass
    return budget


def _choose_batch_tile(batch, dim, itemsize, vmem_budget_bytes):
    """Largest 128-aligned batch tile whose pipelined VMEM footprint fits.

    A (tb, dim) block is lane-padded in VMEM to (tb, roundup(dim, 128)), so the
    per-row cost is:
      2 inputs x 2 pipeline buffers:  4 * padded_dim * itemsize
      f32 product intermediate:           padded_dim * 4
      (dim, tb) transposed intermediate:  dim * 4
    """
    padded_dim = ((max(dim, 1) + 127) // 128) * 128
    per_row = 4 * padded_dim * itemsize + padded_dim * 4 + dim * 4
    max_rows = max(128, vmem_budget_bytes // per_row)
    tb = max(128, (max_rows // 128) * 128)
    # Keep at least two tiles whenever possible so the "parallel" grid axis
    # can be split across v7x's two TensorCores (harmless 2-step pipeline on
    # single-TC v5e/v6e).
    if batch > 128:
        half = ((pl.cdiv(batch, 2) + 127) // 128) * 128
        tb = min(tb, half)
    # Never tile past the (128-rounded) batch itself.
    b_rounded = ((batch + 127) // 128) * 128
    return max(128, min(tb, b_rounded))


def grcn_forward(gu, gi):
    """Pallas implementation of GRCNModel.forward((gu, gi))."""
    gamma_u = _squeeze_like_torch(gu)
    gamma_i = _squeeze_like_torch(gi)
    assert gamma_u.ndim == 2 and gamma_u.shape == gamma_i.shape
    B, D = gamma_u.shape
    itemsize = jnp.dtype(gamma_u.dtype).itemsize

    tb = _choose_batch_tile(B, D, itemsize, _vmem_budget_bytes())
    num_tiles = pl.cdiv(B, tb)

    # Memory-bound hint for XLA's scheduler around the custom call.
    cost = pl.CostEstimate(
        flops=2 * B * D,
        transcendentals=0,
        bytes_accessed=(2 * B * D + B) * itemsize,
    )

    # No wrapper padding: the trailing block is partial.  Its garbage tail
    # rows only affect output lanes past B (no op mixes lanes) and the output
    # writeback is clipped to the true (1, B) extent.
    xui_row = pl.pallas_call(
        _row_dot_kernel,
        out_shape=jax.ShapeDtypeStruct((1, B), gamma_u.dtype),
        grid=(num_tiles,),
        in_specs=[
            pl.BlockSpec((tb, D), lambda i: (i, 0)),
            pl.BlockSpec((tb, D), lambda i: (i, 0)),
        ],
        out_specs=pl.BlockSpec((1, tb), lambda i: (0, i)),
        compiler_params=pltpu.CompilerParams(
            # Batch tiles are independent -> shard across v7x's 2 TensorCores.
            dimension_semantics=("parallel",),
            vmem_limit_bytes=_VMEM_LIMIT_BYTES,
        ),
        cost_estimate=cost,
    )(gamma_u, gamma_i)

    xui = xui_row[0]  # (B,) like torch.sum(..., 1)
    return xui, gamma_u, gamma_i


def _xavier_normal(key, shape):
    # torch.nn.init.xavier_normal_ for a 2-D tensor (rows=fan_out, cols=fan_in)
    fan_out, fan_in = shape
    std = math.sqrt(2.0 / (fan_in + fan_out))
    return std * jax.random.normal(key, shape, dtype=jnp.float32)


def init_grcn_params(key, num_users, num_items, embed_k, embed_k_multimod,
                     modalities, dim_feat):
    """Deterministic parameter init mirroring GRCNModel.__init__ shapes."""
    n_nodes = num_users + num_items
    keys = jax.random.split(key, 3 + 3 * len(modalities))
    params = {
        "id_gcn.id_embedding": _xavier_normal(keys[0], (n_nodes, embed_k)),
        "model_specific_conf": _xavier_normal(keys[1], (n_nodes, len(modalities))),
        "result": _xavier_normal(keys[2], (n_nodes, embed_k)),
        "weight": jnp.array([[1.0], [-1.0]], dtype=jnp.float32),
    }
    for m_id, m in enumerate(modalities):
        k_pref, k_w, k_b = keys[3 + 3 * m_id: 6 + 3 * m_id]
        params[f"{m}_gcn.preference"] = _xavier_normal(
            k_pref, (num_users, embed_k_multimod))
        # torch.nn.Linear(dim_feat, embed_k_multimod): weight (out, in), bias (out,)
        bound = 1.0 / math.sqrt(dim_feat)
        params[f"{m}_gcn.MLP.weight"] = jax.random.uniform(
            k_w, (embed_k_multimod, dim_feat), jnp.float32, -bound, bound)
        params[f"{m}_gcn.MLP.bias"] = jax.random.uniform(
            k_b, (embed_k_multimod,), jnp.float32, -bound, bound)
    return params


if __name__ == "__main__":
    key = jax.random.PRNGKey(0)
    k_params, k_gu, k_gi, k_gu2, k_gi2 = jax.random.split(key, 5)

    # Small, module-consistent sizes.
    num_users, num_items = 8, 8
    embed_k, embed_k_multimod = 32, 32
    modalities = ["v", "a", "t"]
    dim_feat = 16

    params = init_grcn_params(
        k_params, num_users, num_items, embed_k, embed_k_multimod,
        modalities, dim_feat)

    # forward() inputs: user / item embedding rows, with a singleton dim that
    # torch.squeeze removes.
    B = 16
    gu = jax.random.normal(k_gu, (B, 1, embed_k), dtype=jnp.float32)
    gi = jax.random.normal(k_gi, (B, 1, embed_k), dtype=jnp.float32)

    xui, gamma_u, gamma_i = grcn_forward(gu, gi)
    jax.block_until_ready((xui, gamma_u, gamma_i))

    # Reference check (plain JAX) of the forward-pass semantics.
    ref_xui = jnp.sum(jnp.squeeze(gu) * jnp.squeeze(gi), axis=1)
    assert xui.shape == (B,)
    assert gamma_u.shape == (B, embed_k) and gamma_i.shape == (B, embed_k)
    assert jnp.allclose(xui, ref_xui, atol=1e-5)
    assert jnp.allclose(gamma_u, jnp.squeeze(gu))
    assert jnp.allclose(gamma_i, jnp.squeeze(gi))

    # Second check: 2-D inputs (no singleton dim, like gu[user[:, 0]] in the
    # module), ragged batch that exercises partial trailing blocks and the
    # multi-tile (>=2 tiles) parallel grid.  No wrapper padding is used.
    B2 = 2000
    gu_big = jax.random.normal(k_gu2, (B2, embed_k), dtype=jnp.float32)
    gi_big = jax.random.normal(k_gi2, (B2, embed_k), dtype=jnp.float32)
    xui2, gu_out, gi_out = grcn_forward(gu_big, gi_big)
    jax.block_until_ready(xui2)
    ref_xui2 = jnp.sum(gu_big * gi_big, axis=1)
    assert xui2.shape == (B2,)
    assert jnp.allclose(xui2, ref_xui2, atol=1e-5)
    assert jnp.allclose(gu_out, gu_big) and jnp.allclose(gi_out, gi_big)

    # Third check: bf16 inputs (f32 accumulation inside the kernel).
    gu_bf = gu_big.astype(jnp.bfloat16)
    gi_bf = gi_big.astype(jnp.bfloat16)
    xui3, _, _ = grcn_forward(gu_bf, gi_bf)
    jax.block_until_ready(xui3)
    ref_xui3 = jnp.sum(gu_bf.astype(jnp.float32) * gi_bf.astype(jnp.float32), axis=1)
    assert xui3.shape == (B2,) and xui3.dtype == jnp.bfloat16
    assert jnp.allclose(xui3.astype(jnp.float32), ref_xui3, atol=5e-2, rtol=5e-2)

    print("KERNEL_OK")
</pallas_src>

<mosaic_0001>
module attributes {stable_mosaic.version = 11 : i64} {
  func.func @_row_dot_kernel(%arg0: i32, %arg1: memref<128x32xf32, #tpu.memory_space<vmem>>, %arg2: memref<128x32xf32, #tpu.memory_space<vmem>>, %arg3: memref<1x128xf32, #tpu.memory_space<vmem>>) attributes {dimension_semantics = [#tpu.dimension_semantics<parallel>], iteration_bounds = array<i64: 1>, scalar_prefetch = 0 : i64, scratch_operands = 0 : i64, tpu.core_type = #tpu.core_type<tc>, window_params = [{transform_indices = @transform_0, window_bounds = array<i64: 128, 32>}, {transform_indices = @transform_1, window_bounds = array<i64: 128, 32>}, {transform_indices = @transform_2, window_bounds = array<i64: 1, 128>}]} {
    %c0 = arith.constant 0 : index
    %c0_0 = arith.constant 0 : index
    %0 = vector.load %arg1[%c0, %c0_0] : memref<128x32xf32, #tpu.memory_space<vmem>>, vector<128x32xf32>
    %c0_1 = arith.constant 0 : index
    %c0_2 = arith.constant 0 : index
    %1 = vector.load %arg2[%c0_1, %c0_2] : memref<128x32xf32, #tpu.memory_space<vmem>>, vector<128x32xf32>
    %2 = arith.mulf %0, %1 : vector<128x32xf32>
    %3 = tpu.transpose %2, [1, 0] : vector<128x32xf32> -> vector<32x128xf32>
    %cst = arith.constant dense<0.000000e+00> : vector<128xf32>
    %4 = vector.multi_reduction <add>, %3, %cst [0] : vector<32x128xf32> to vector<128xf32>
    %5 = vector.shape_cast %4 : vector<128xf32> to vector<1x128xf32>
    %c0_3 = arith.constant 0 : index
    %c0_4 = arith.constant 0 : index
    %6 = vector.load %arg3[%c0_3, %c0_4] : memref<1x128xf32, #tpu.memory_space<vmem>>, vector<1x128xf32>
    tpu.vector_store %arg3[%c0_3, %c0_4], %5 {strides = array<i32>} : memref<1x128xf32, #tpu.memory_space<vmem>>, vector<1x128xf32>,
    return
  }
  func.func @transform_0(%arg0: i32) -> (i32, i32) {
    %c0_i32 = arith.constant 0 : i32
    %c0_i32_0 = arith.constant 0 : i32
    return %arg0, %c0_i32 : i32, i32
  }
  func.func @transform_1(%arg0: i32) -> (i32, i32) {
    %c0_i32 = arith.constant 0 : i32
    %c0_i32_0 = arith.constant 0 : i32
    return %arg0, %c0_i32 : i32, i32
  }
  func.func @transform_2(%arg0: i32) -> (i32, i32) {
    %c0_i32 = arith.constant 0 : i32
    %c0_i32_0 = arith.constant 0 : i32
    return %c0_i32, %arg0 : i32, i32
  }
}

</mosaic_0001>

<bundles_post_ra>
// kernel: tpu_custom_call.1
= control target key start
LH: loop header
LB: loop body
LE: loop exit
PB: predicated region body
PF: predicated region fallthrough
CT: control target
= control target key end

     0   :  { %7 = vsyncpa [#allocation3], 0  ;;  %s279_s0 = inlined_call_operand.hbm [shape: f32[16,32], index: 0, kind: input, shape index: {}]   ;;  %s280_s1 = inlined_call_operand.hbm [shape: f32[16,32], index: 1, kind: input, shape index: {}]   ;;  %s281_s2 = inlined_call_operand.hbm [shape: f32[1,16], index: 2, kind: output, shape index: {}]  }
   0x1   :  { %8 = vsyncpa [#allocation6], 0 }
   0x2   :  { %9 = vsyncpa [#allocation4], 0 }
   0x3   :  { %14 = vsyncadd [#allocation3], 1792  ;;  %s223_s9 = smov [#allocation2]   ;;  %s151_s13 = scalar_lea.hbm %s279_s0, 256 }
   0x4   :  { %s15_s10 = sshll.u32 %s223_s9, 4  ;;  %p152_p0 = scmp.ne.s32.totalorder %s279_s0, %s151_s13  ;;  %s16_s10 = int_to_ptr.vmem [resolvable:$true] %s15_s10 }
   0x5   :  { %p155_p1 = scmp.lt.u32.totalorder %s151_s13, %s279_s0 }
   0x7   :  { %p157_p2 = pnand %p155_p1, %p152_p0 }
   0x9   :  { %160 = shalt.err (!%p157_p2)
}
   0xa   :  { %s161_s18 = scalar_lea.vmem %s16_s10, 256  ;;  %s165_s19 = scalar_lea.vmem %s16_s10, 2048 }
   0xb   :  { %p162_p3 = scmp.ne.s32.totalorder %s16_s10, %s161_s18  ;;  %p166_p4 = scmp.lt.s32.totalorder %s16_s10, %s16_s10 }
   0xc   :  { %p167_p5 = scmp.lt.s32.totalorder %s165_s19, %s161_s18 }
   0xe   :  { %p168_p6 = por %p167_p5, %p166_p4 }
  0x10   :  { %p169_p7 = pnand %p168_p6, %p162_p3 }
  0x12   :  { %172 = shalt.err (!%p169_p7)
}
  0x13   :  { %s224_s20 = smov 128   ;;  %s225_s21 = smov 8  }
  0x14   :  { %21 = dma.hbm_to_vmem [thread:$0]  %s279_s0, 256, %s16_s10, [#allocation3], %s224_s20, %s224_s20, %s225_s21  }
  0x15   :  { %26 = vsyncadd [#allocation6], 1792  ;;  %s226_s24 = smov [#allocation5]   ;;  %s173_s28 = scalar_lea.hbm %s280_s1, 256 }
  0x16   :  { %s27_s25 = sshll.u32 %s226_s24, 4  ;;  %p174_p8 = scmp.ne.s32.totalorder %s280_s1, %s173_s28  ;;  %s28_s25 = int_to_ptr.vmem [resolvable:$true] %s27_s25 }
  0x17   :  { %p177_p9 = scmp.lt.u32.totalorder %s173_s28, %s280_s1 }
  0x19   :  { %p179_p10 = pnand %p177_p9, %p174_p8 }
  0x1b   :  { %182 = shalt.err (!%p179_p10)
}
  0x1c   :  { %s183_s5 = scalar_lea.vmem %s28_s25, 256  ;;  %s187_s0 = scalar_lea.vmem %s28_s25, 2048 }
  0x1d   :  { %p184_p11 = scmp.ne.s32.totalorder %s28_s25, %s183_s5  ;;  %p188_p12 = scmp.lt.s32.totalorder %s28_s25, %s28_s25 }
  0x1e   :  { %p189_p13 = scmp.lt.s32.totalorder %s187_s0, %s183_s5 }
  0x20   :  { %p190_p0 = por %p189_p13, %p188_p12 }
  0x22   :  { %p191_p1 = pnand %p190_p0, %p184_p11 }
  0x24   :  { %194 = shalt.err (!%p191_p1)
}
  0x25   :  { %33 = dma.hbm_to_vmem [thread:$0]  %s280_s1, 256, %s28_s25, [#allocation6], %s224_s20, %s224_s20, %s225_s21  }
  0x26   :  { %217 = dma.done.wait [#allocation3], 2048  }
  0x27   :  { %218 = vsyncadd [#allocation3], 4294965248 }
  0x28   :  { %219 = dma.done.wait [#allocation6], 2048  }
  0x29   :  { %220 = vsyncadd [#allocation6], 4294965248  ;;  %v40_v0 = vld [vmem:[#allocation2] sm:$0xff]  ;;  %v41_v2 = vld [vmem:[#allocation2 + $0x8] sm:$0xff]  ;;  %s227_s1 = smov [#allocation7]  }
  0x2a   :  { %v56_v1 = vld [vmem:[#allocation5] sm:$0xff]  ;;  %v57_v4 = vld [vmem:[#allocation5 + $0x8] sm:$0xff]  ;;  %v42_v6 = vld [vmem:[#allocation2 + $0x10] sm:$0xff]  ;;  %s136_s8 = sshll.u32 %s227_s1, 4  ;;  %s137_s8 = int_to_ptr.vmem [resolvable:$true] %s136_s8 }
  0x2b   :  { %v72_v3 = vmul.f32 %v56_v1, %v40_v0  ;;  %v73_v5 = vmul.f32 %v57_v4, %v41_v2  ;;  %v58_v7 = vld [vmem:[#allocation5 + $0x10] sm:$0xff]  ;;  %v43_v9 = vld [vmem:[#allocation2 + $0x18] sm:$0xff]  ;;  %v44_v12 = vld [vmem:[#allocation2 + $0x20] sm:$0xff]  ;;  %s195_s9 = scalar_lea.vmem %s137_s8, 16  ;;  %s199_s10 = scalar_lea.vmem %s137_s8, 32 }
  0x2c   :  { %v74_v8 = vmul.f32 %v58_v7, %v42_v6  ;;  %v59_v10 = vld [vmem:[#allocation5 + $0x18] sm:$0xff]  ;;  %v60_v13 = vld [vmem:[#allocation5 + $0x20] sm:$0xff]  ;;  %v45_v15 = vld [vmem:[#allocation2 + $0x28] sm:$0xff]  ;;  %p196_p2 = scmp.ne.s32.totalorder %s137_s8, %s195_s9  ;;  %p200_p3 = scmp.lt.s32.totalorder %s137_s8, %s137_s8 }
  0x2d   :  { %88 = vxpose.xlu0.b32.start [1/16] (narrow) %v72_v3, 32  ;;  %v75_v11 = vmul.f32 %v59_v10, %v43_v9  ;;  %v76_v14 = vmul.f32 %v60_v13, %v44_v12  ;;  %v61_v16 = vld [vmem:[#allocation5 + $0x28] sm:$0xff]  ;;  %v46_v18 = vld [vmem:[#allocation2 + $0x30] sm:$0xff]  ;;  %v47_v21 = vld [vmem:[#allocation2 + $0x38] sm:$0xff]  ;;  %p201_p4 = scmp.lt.s32.totalorder %s199_s10, %s195_s9 }
  0x2e   :  { %v77_v17 = vmul.f32 %v61_v16, %v45_v15  ;;  %v62_v19 = vld [vmem:[#allocation5 + $0x30] sm:$0xff]  ;;  %v63_v22 = vld [vmem:[#allocation5 + $0x38] sm:$0xff]  ;;  %v48_v24 = vld [vmem:[#allocation2 + $0x40] sm:$0xff] }
  0x2f   :  { %v78_v20 = vmul.f32 %v62_v19, %v46_v18  ;;  %v79_v23 = vmul.f32 %v63_v22, %v47_v21  ;;  %v64_v25 = vld [vmem:[#allocation5 + $0x40] sm:$0xff]  ;;  %v49_v27 = vld [vmem:[#allocation2 + $0x48] sm:$0xff]  ;;  %v50_v30 = vld [vmem:[#allocation2 + $0x50] sm:$0xff]  ;;  %p202_p5 = por %p201_p4, %p200_p3 }
  0x30   :  { %v80_v26 = vmul.f32 %v64_v25, %v48_v24  ;;  %v65_v28 = vld [vmem:[#allocation5 + $0x48] sm:$0xff]  ;;  %v66_v31 = vld [vmem:[#allocation5 + $0x50] sm:$0xff]  ;;  %v51_v33 = vld [vmem:[#allocation2 + $0x58] sm:$0xff] }
  0x31   :  { %89 = vxpose.xlu0.b32.cont [2/16] (narrow) %v73_v5, 32  ;;  %v81_v29 = vmul.f32 %v65_v28, %v49_v27  ;;  %v82_v32 = vmul.f32 %v66_v31, %v50_v30  ;;  %v67_v34 = vld [vmem:[#allocation5 + $0x58] sm:$0xff]  ;;  %v52_v36 = vld [vmem:[#allocation2 + $0x60] sm:$0xff]  ;;  %v53_v39 = vld [vmem:[#allocation2 + $0x68] sm:$0xff]  ;;  %p203_p6 = pnand %p202_p5, %p196_p2 }
  0x32   :  { %v83_v35 = vmul.f32 %v67_v34, %v51_v33  ;;  %v68_v37 = vld [vmem:[#allocation5 + $0x60] sm:$0xff]  ;;  %v69_v40 = vld [vmem:[#allocation5 + $0x68] sm:$0xff]  ;;  %v54_v42 = vld [vmem:[#allocation2 + $0x70] sm:$0xff] }
  0x33   :  { %v84_v38 = vmul.f32 %v68_v37, %v52_v36  ;;  %v85_v41 = vmul.f32 %v69_v40, %v53_v39  ;;  %v70_v43 = vld [vmem:[#allocation5 + $0x70] sm:$0xff]  ;;  %v55_v45 = vld [vmem:[#allocation2 + $0x78] sm:$0xff] }
  0x34   :  { %v86_v44 = vmul.f32 %v70_v43, %v54_v42  ;;  %v71_v46 = vld [vmem:[#allocation5 + $0x78] sm:$0xff] }
  0x35   :  { %90 = vxpose.xlu0.b32.cont [3/16] (narrow) %v74_v8, 32  ;;  %v87_v47 = vmul.f32 %v71_v46, %v55_v45 }
  0x39   :  { %91 = vxpose.xlu0.b32.cont [4/16] (narrow) %v75_v11, 32 }
  0x3d   :  { %92 = vxpose.xlu0.b32.cont [5/16] (narrow) %v76_v14, 32 }
  0x41   :  { %93 = vxpose.xlu0.b32.cont [6/16] (narrow) %v77_v17, 32 }
  0x45   :  { %94 = vxpose.xlu0.b32.cont [7/16] (narrow) %v78_v20, 32 }
  0x49   :  { %95 = vxpose.xlu0.b32.cont [8/16] (narrow) %v79_v23, 32 }
  0x4d   :  { %96 = vxpose.xlu0.b32.cont [9/16] (narrow) %v80_v26, 32 }
  0x51   :  { %97 = vxpose.xlu0.b32.cont [10/16] (narrow) %v81_v29, 32 }
  0x55   :  { %98 = vxpose.xlu0.b32.cont [11/16] (narrow) %v82_v32, 32 }
  0x59   :  { %99 = vxpose.xlu0.b32.cont [12/16] (narrow) %v83_v35, 32 }
  0x5d   :  { %100 = vxpose.xlu0.b32.cont [13/16] (narrow) %v84_v38, 32 }
  0x61   :  { %101 = vxpose.xlu0.b32.cont [14/16] (narrow) %v85_v41, 32 }
  0x65   :  { %102 = vxpose.xlu0.b32.cont [15/16] (narrow) %v86_v44, 32 }
  0x69   :  { %103 = vxpose.xlu0.b32.end [16/16] (narrow) %v87_v47, 32 }
  0xad   :  { %v104_v48 = vpop.trf.xlu0 }
  0xb1   :  { %v105_v49 = vpop.trf.xlu0 }
  0xb2   :  { %v120_v51 = vadd.f32 %v105_v49, %v104_v48 }
  0xb5   :  { %v106_v50 = vpop.trf.xlu0 }
  0xb6   :  { %v121_v52 = vadd.f32 %v120_v51, %v106_v50 }
  0xb9   :  { %v107_v53 = vpop.trf.xlu0 }
  0xba   :  { %v122_v54 = vadd.f32 %v121_v52, %v107_v53 }
  0xbc   :  { %v123_v55 = vrot.slane %v122_v54, 4 }
  0xbe   :  { %v124_v56 = vadd.f32 %v123_v55, %v122_v54 }
  0xc0   :  { %v125_v57 = vrot.slane %v124_v56, 2 }
  0xc2   :  { %v126_v58 = vadd.f32 %v125_v57, %v124_v56 }
  0xc4   :  { %v127_v59 = vrot.slane %v126_v58, 1 }
  0xc6   :  { %v128_v60 = vadd.f32 %v127_v59, %v126_v58 }
  0xc8   :  { %129 = vst [vmem:[#allocation7] sm:$0x1] %v128_v60 }
  0xc9   :  { %206 = shalt.err (!%p203_p6)
}
  0xca   :  { %s207_s13 = scalar_lea.hbm %s281_s2, 16 }
  0xcb   :  { %p208_p7 = scmp.ne.s32.totalorder %s281_s2, %s207_s13  ;;  %p211_p8 = scmp.lt.u32.totalorder %s207_s13, %s281_s2 }
  0xcd   :  { %p213_p9 = pnand %p211_p8, %p208_p7 }
  0xcf   :  { %216 = shalt.err (!%p213_p9)
}
  0xd0   :  { %139 = dma.vmem_to_hbm [thread:$0]  %s137_s8, 16, %s281_s2, [#allocation4]  }
  0xd1   :  { %221 = dma.done.wait [#allocation4], 16  }
  0xd2   :  { %222 = vsyncadd [#allocation4], 4294967280 }
  0xd3   :  { %143 = vsyncpa [#allocation3], 1 }
  0xd4   :  { %144 = vsyncpa [#allocation6], 1 }
  0xd5   :  { %145 = vsyncpa [#allocation4], 1 }

</bundles_post_ra>
